<compile_context>
chip_gen: v7x
topology: tpu7x:2x2x1
jax: 0.10.0
libtpu: 0.0.40
codegen_flags: <defaults>
</compile_context>

<pallas_src>
import functools

import jax
import jax.numpy as jnp
import numpy as np
from jax import lax
from jax.experimental import pallas as pl
from jax.experimental.pallas import tpu as pltpu

EPS = 1e-5


def _bottleneck_kernel(N, H, W, CIN, COUT,
                       x_ref, w1_ref, g1_ref, beta1_ref,
                       w2_ref, g2_ref, beta2_ref,
                       okup_ref, okdn_ref,
                       gout_ref, goutt_ref, gin_ref, gint_ref,
                       o_ref):
    NH = N * H
    WCI = W * CIN
    WCO = W * COUT
    inv_n = 1.0 / float(N * H * W)

    ok_up = okup_ref[...]          # (NH, 1) f32 : row has a valid h+1 neighbour
    ok_dn = okdn_ref[...]          # (NH, 1) f32 : row has a valid h-1 neighbour

    def conv3x3(x_f32, w_ref, wcin):
        # x_f32: (NH, W*Cin) f32 -> (NH, W*Cout) f32 ; 3x3 SAME conv, stride 1.
        # Vertical (kh) taps via XLU sublane rolls + halo masks; horizontal taps and
        # channel mixing live in the banded weight.  Three accumulated MXU dots — the
        # (NH, 3*W*Cin) patches slab is never materialized.
        dn = pltpu.roll(x_f32, 1, axis=0) * ok_dn        # row r <- x[r-1]
        up = pltpu.roll(x_f32, NH - 1, axis=0) * ok_up   # row r <- x[r+1]
        y = jnp.dot(dn.astype(jnp.bfloat16), w_ref[0:wcin, :],
                    preferred_element_type=jnp.float32)
        y = y + jnp.dot(x_f32.astype(jnp.bfloat16), w_ref[wcin:2 * wcin, :],
                        preferred_element_type=jnp.float32)
        y = y + jnp.dot(up.astype(jnp.bfloat16), w_ref[2 * wcin:3 * wcin, :],
                        preferred_element_type=jnp.float32)
        return y

    def bn_relu(y, g_ref, beta_ref, gmat, gmat_t):
        # Training-mode BatchNorm over (N, H, W) per channel + ReLU, fused moment sweep.
        s = jnp.sum(y, axis=0, keepdims=True)                       # (1, W*C)
        ss = jnp.sum(y * y, axis=0, keepdims=True)                  # (1, W*C)
        mom = jnp.dot(jnp.concatenate([s, ss], axis=0), gmat,
                      preferred_element_type=jnp.float32)           # (2, C)
        mean = mom[0:1, :] * inv_n                                  # (1, C)
        var = mom[1:2, :] * inv_n - mean * mean                     # (1, C)
        scale = g_ref[...] * lax.rsqrt(var + EPS)                   # (1, C)
        shift = beta_ref[...] - scale * mean                        # (1, C)
        sl = jnp.dot(jnp.concatenate([scale, shift], axis=0), gmat_t,
                     preferred_element_type=jnp.float32)            # (2, W*C)
        return jnp.maximum(y * sl[0:1, :] + sl[1:2, :], 0.0)

    gout, goutt = gout_ref[...], goutt_ref[...]
    gin, gint = gin_ref[...], gint_ref[...]

    x = x_ref[...].astype(jnp.float32)                              # (NH, W*CIN)
    x1 = bn_relu(conv3x3(x, w1_ref, WCI), g1_ref, beta1_ref, gout, goutt)   # conv1/norm1
    x2 = bn_relu(conv3x3(x1, w2_ref, WCO), g2_ref, beta2_ref, gin, gint)    # conv2/norm2
    x3 = bn_relu(conv3x3(x2, w1_ref, WCI), g1_ref, beta1_ref, gout, goutt)  # shared conv1/norm1
    o_ref[...] = x3                                                 # (NH, W*COUT) lane-dense


def expand_conv_weight(w_hwio, W):
    # (3, 3, Cin, Cout) HWIO -> (3*W*Cin, W*Cout) block-banded matrix so a 3x3 SAME conv
    # becomes lane-dense matmuls.  Rows index (kh, w_in, ci), columns index (w_out, co);
    # nonzero only where w_in == w_out + (kw - 1) (zero-pad = band falling off the edge).
    KH, KW, Cin, Cout = w_hwio.shape
    wi = np.arange(W)
    shift = np.stack([(wi[:, None] == wi[None, :] + (kw - 1)).astype(np.float32)
                      for kw in range(KW)], axis=0)                 # (KW, w_in, w_out)
    big = jnp.einsum('hkio,kvu->hviuo', w_hwio, jnp.asarray(shift)) # (KH, W, Cin, W, Cout)
    return big.reshape(KH * W * Cin, W * Cout)


def _chan_onehot(W, C):
    # One-hot group matrices over the merged W*C lane axis: (W*C, C) and (C, W*C).
    lane = np.arange(W * C)
    g = (lane[:, None] % C == np.arange(C)[None, :]).astype(np.float32)
    return jnp.asarray(g), jnp.asarray(np.ascontiguousarray(g.T))


def bottleneck_block(x_nchw, params):
    N, CIN, H, W = x_nchw.shape
    COUT = params["w1"].shape[-1]
    NH, WCI, WCO = N * H, W * CIN, W * COUT

    # NCHW -> lane-dense (N*H, W*C), pre-cast to bf16 (MXU input dtype) in the wrapper.
    x2d = jnp.transpose(x_nchw, (0, 2, 3, 1)).reshape(NH, WCI).astype(jnp.bfloat16)

    # Banded conv weights, pre-cast to bf16 once.  Conv biases are dropped: they are
    # cancelled exactly by the training-mode BN mean subtraction that follows each conv.
    bw1 = expand_conv_weight(params["w1"], W).astype(jnp.bfloat16)  # (3*W*CIN, W*COUT)
    bw2 = expand_conv_weight(params["w2"], W).astype(jnp.bfloat16)  # (3*W*COUT, W*CIN)

    # Halo masks for the +/-1 row shifts; rows are n*H + h.
    h_of_row = np.arange(NH, dtype=np.int64) % H
    ok_up = jnp.asarray((h_of_row != H - 1).astype(np.float32).reshape(NH, 1))
    ok_dn = jnp.asarray((h_of_row != 0).astype(np.float32).reshape(NH, 1))

    # One-hot channel-group matrices for the BN moment reduction / re-broadcast.
    g_out, gt_out = _chan_onehot(W, COUT)
    g_in, gt_in = _chan_onehot(W, CIN)

    kernel = functools.partial(_bottleneck_kernel, N, H, W, CIN, COUT)
    vmem = pl.BlockSpec(memory_space=pltpu.MemorySpace.VMEM)

    # Cost / VMEM accounting for the compiler.
    in_bytes = (x2d.size * 2 + bw1.size * 2 + bw2.size * 2
                + (2 * COUT + 2 * CIN) * 4 + 2 * NH * 4
                + 2 * (WCO * COUT + WCI * CIN) * 4)
    out_bytes = NH * WCO * 4
    act_bytes = NH * max(WCI, WCO) * 4
    flops = 18 * NH * WCI * WCO + 12 * NH * (WCI + 2 * WCO)
    cost = pl.CostEstimate(flops=int(flops),
                           transcendentals=int(2 * COUT + CIN),
                           bytes_accessed=int(in_bytes + out_bytes))
    vmem_limit = int(min(96 * 2**20,
                         max(16 * 2**20, 8 * (in_bytes + out_bytes + 6 * act_bytes))))

    out2d = pl.pallas_call(
        kernel,
        out_shape=jax.ShapeDtypeStruct((NH, WCO), jnp.float32),
        in_specs=[vmem] * 13,
        out_specs=vmem,
        compiler_params=pltpu.CompilerParams(vmem_limit_bytes=vmem_limit),
        cost_estimate=cost,
    )(x2d,
      bw1, params["g1"], params["beta1"],
      bw2, params["g2"], params["beta2"],
      ok_up, ok_dn,
      g_out, gt_out, g_in, gt_in)

    # lane-dense (N*H, W*COUT) -> NCHW
    return jnp.transpose(out2d.reshape(N, H, W, COUT), (0, 3, 1, 2))


def reference(x_nchw, params):
    # Pure-JAX reference of the PyTorch forward (training-mode BN, biases included).
    x = jnp.transpose(x_nchw, (0, 2, 3, 1)).astype(jnp.float32)

    def conv(v, w, b):
        y = jax.lax.conv_general_dilated(
            v, w, window_strides=(1, 1), padding="SAME",
            dimension_numbers=("NHWC", "HWIO", "NHWC"),
            precision=jax.lax.Precision.HIGHEST)
        return y + b.reshape(1, 1, 1, -1)

    def bn(v, g, be):
        m = jnp.mean(v, axis=(0, 1, 2), keepdims=True)
        var = jnp.mean((v - m) ** 2, axis=(0, 1, 2), keepdims=True)
        return (g.reshape(1, 1, 1, -1) * (v - m) / jnp.sqrt(var + EPS)
                + be.reshape(1, 1, 1, -1))

    relu = lambda v: jnp.maximum(v, 0.0)
    x1 = relu(bn(conv(x, params["w1"], params["b1"]), params["g1"], params["beta1"]))
    x2 = relu(bn(conv(x1, params["w2"], params["b2"]), params["g2"], params["beta2"]))
    x3 = relu(bn(conv(x2, params["w1"], params["b1"]), params["g1"], params["beta1"]))
    return jnp.transpose(x3, (0, 3, 1, 2))


def make_params(key, in_ch, out_ch):
    k1, k2, k3, k4 = jax.random.split(key, 4)
    return {
        # conv1: in_ch -> out_ch, 3x3 ; conv2: out_ch -> in_ch, 3x3 (HWIO)
        "w1": 0.2 * jax.random.normal(k1, (3, 3, in_ch, out_ch), jnp.float32),
        "b1": 0.1 * jax.random.normal(k2, (1, out_ch), jnp.float32),
        "w2": 0.2 * jax.random.normal(k3, (3, 3, out_ch, in_ch), jnp.float32),
        "b2": 0.1 * jax.random.normal(k4, (1, in_ch), jnp.float32),
        # BatchNorm affine params (PyTorch default init: weight=1, bias=0)
        "g1": jnp.ones((1, out_ch), jnp.float32),
        "beta1": jnp.zeros((1, out_ch), jnp.float32),
        "g2": jnp.ones((1, in_ch), jnp.float32),
        "beta2": jnp.zeros((1, in_ch), jnp.float32),
    }


if __name__ == "__main__":
    key = jax.random.PRNGKey(0)
    kx, kp = jax.random.split(key)

    N, IN_CH, OUT_CH, HW = 2, 4, 8, 16
    x = jax.random.normal(kx, (N, IN_CH, HW, HW), jnp.float32)   # NCHW like PyTorch
    params = make_params(kp, IN_CH, OUT_CH)

    fwd = jax.jit(bottleneck_block)
    out = jax.block_until_ready(fwd(x, params))
    ref = jax.block_until_ready(reference(x, params))

    assert out.shape == (N, OUT_CH, HW, HW), out.shape
    max_err = float(jnp.max(jnp.abs(out - ref)))
    assert np.isfinite(max_err) and max_err < 5e-2, f"max abs err too large: {max_err}"

    print("KERNEL_OK")
</pallas_src>

<mosaic_0001>
module attributes {stable_mosaic.version = 11 : i64} {
  func.func @_bottleneck_kernel(%arg0: memref<32x64xbf16, #tpu.memory_space<vmem>>, %arg1: memref<192x128xbf16, #tpu.memory_space<vmem>>, %arg2: memref<1x8xf32, #tpu.memory_space<vmem>>, %arg3: memref<1x8xf32, #tpu.memory_space<vmem>>, %arg4: memref<384x64xbf16, #tpu.memory_space<vmem>>, %arg5: memref<1x4xf32, #tpu.memory_space<vmem>>, %arg6: memref<1x4xf32, #tpu.memory_space<vmem>>, %arg7: memref<32x1xf32, #tpu.memory_space<vmem>>, %arg8: memref<32x1xf32, #tpu.memory_space<vmem>>, %arg9: memref<128x8xf32, #tpu.memory_space<vmem>>, %arg10: memref<8x128xf32, #tpu.memory_space<vmem>>, %arg11: memref<64x4xf32, #tpu.memory_space<vmem>>, %arg12: memref<4x64xf32, #tpu.memory_space<vmem>>, %arg13: memref<32x128xf32, #tpu.memory_space<vmem>>) attributes {dimension_semantics = [], scalar_prefetch = 0 : i64, scratch_operands = 0 : i64, tpu.core_type = #tpu.core_type<tc>} {
    %c0 = arith.constant 0 : index
    %c0_0 = arith.constant 0 : index
    %0 = vector.load %arg7[%c0, %c0_0] : memref<32x1xf32, #tpu.memory_space<vmem>>, vector<32x1xf32>
    %c0_1 = arith.constant 0 : index
    %c0_2 = arith.constant 0 : index
    %1 = vector.load %arg8[%c0_1, %c0_2] : memref<32x1xf32, #tpu.memory_space<vmem>>, vector<32x1xf32>
    %c0_3 = arith.constant 0 : index
    %c0_4 = arith.constant 0 : index
    %2 = vector.load %arg9[%c0_3, %c0_4] : memref<128x8xf32, #tpu.memory_space<vmem>>, vector<128x8xf32>
    %c0_5 = arith.constant 0 : index
    %c0_6 = arith.constant 0 : index
    %3 = vector.load %arg10[%c0_5, %c0_6] : memref<8x128xf32, #tpu.memory_space<vmem>>, vector<8x128xf32>
    %c0_7 = arith.constant 0 : index
    %c0_8 = arith.constant 0 : index
    %4 = vector.load %arg11[%c0_7, %c0_8] : memref<64x4xf32, #tpu.memory_space<vmem>>, vector<64x4xf32>
    %c0_9 = arith.constant 0 : index
    %c0_10 = arith.constant 0 : index
    %5 = vector.load %arg12[%c0_9, %c0_10] : memref<4x64xf32, #tpu.memory_space<vmem>>, vector<4x64xf32>
    %c0_11 = arith.constant 0 : index
    %c0_12 = arith.constant 0 : index
    %6 = vector.load %arg0[%c0_11, %c0_12] : memref<32x64xbf16, #tpu.memory_space<vmem>>, vector<32x64xbf16>
    %7 = arith.extf %6 : vector<32x64xbf16> to vector<32x64xf32>
    %c1_i32 = arith.constant 1 : i32
    %8 = tpu.dynamic_rotate %7 by %c1_i32 dim 0 : vector<32x64xf32>, i32 -> vector<32x64xf32>
    %9 = vector.broadcast %1 : vector<32x1xf32> to vector<32x64xf32>
    %10 = arith.mulf %8, %9 : vector<32x64xf32>
    %c31_i32 = arith.constant 31 : i32
    %11 = tpu.dynamic_rotate %7 by %c31_i32 dim 0 : vector<32x64xf32>, i32 -> vector<32x64xf32>
    %12 = vector.broadcast %0 : vector<32x1xf32> to vector<32x64xf32>
    %13 = arith.mulf %11, %12 : vector<32x64xf32>
    %14 = arith.truncf %10 : vector<32x64xf32> to vector<32x64xbf16>
    %c0_13 = arith.constant 0 : index
    %c0_14 = arith.constant 0 : index
    %15 = vector.load %arg1[%c0_13, %c0_14] : memref<192x128xbf16, #tpu.memory_space<vmem>>, vector<64x128xbf16>
    %cst = arith.constant dense<0.000000e+00> : vector<32x128xf32>
    %16 = tpu.matmul %14, %15, %cst {dimension_numbers = #tpu.dot_dimension_numbers<[1], [0], [0], [1], [0, 0, 1, 1], [], []>} : vector<32x64xbf16>, vector<64x128xbf16>, vector<32x128xf32> -> vector<32x128xf32>
    %17 = arith.truncf %7 : vector<32x64xf32> to vector<32x64xbf16>
    %c64 = arith.constant 64 : index
    %c0_15 = arith.constant 0 : index
    %18 = vector.load %arg1[%c64, %c0_15] : memref<192x128xbf16, #tpu.memory_space<vmem>>, vector<64x128xbf16>
    %cst_16 = arith.constant dense<0.000000e+00> : vector<32x128xf32>
    %19 = tpu.matmul %17, %18, %cst_16 {dimension_numbers = #tpu.dot_dimension_numbers<[1], [0], [0], [1], [0, 0, 1, 1], [], []>} : vector<32x64xbf16>, vector<64x128xbf16>, vector<32x128xf32> -> vector<32x128xf32>
    %20 = arith.addf %16, %19 : vector<32x128xf32>
    %21 = arith.truncf %13 : vector<32x64xf32> to vector<32x64xbf16>
    %c128 = arith.constant 128 : index
    %c0_17 = arith.constant 0 : index
    %22 = vector.load %arg1[%c128, %c0_17] : memref<192x128xbf16, #tpu.memory_space<vmem>>, vector<64x128xbf16>
    %cst_18 = arith.constant dense<0.000000e+00> : vector<32x128xf32>
    %23 = tpu.matmul %21, %22, %cst_18 {dimension_numbers = #tpu.dot_dimension_numbers<[1], [0], [0], [1], [0, 0, 1, 1], [], []>} : vector<32x64xbf16>, vector<64x128xbf16>, vector<32x128xf32> -> vector<32x128xf32>
    %24 = arith.addf %20, %23 : vector<32x128xf32>
    %cst_19 = arith.constant dense<0.000000e+00> : vector<128xf32>
    %25 = vector.multi_reduction <add>, %24, %cst_19 [0] : vector<32x128xf32> to vector<128xf32>
    %26 = vector.shape_cast %25 : vector<128xf32> to vector<1x128xf32>
    %27 = arith.mulf %24, %24 : vector<32x128xf32>
    %cst_20 = arith.constant dense<0.000000e+00> : vector<128xf32>
    %28 = vector.multi_reduction <add>, %27, %cst_20 [0] : vector<32x128xf32> to vector<128xf32>
    %29 = vector.shape_cast %28 : vector<128xf32> to vector<1x128xf32>
    %30 = tpu.concatenate %26, %29 in 0 : vector<1x128xf32>, vector<1x128xf32> -> vector<2x128xf32>
    %cst_21 = arith.constant dense<0.000000e+00> : vector<2x8xf32>
    %31 = tpu.matmul %30, %2, %cst_21 {dimension_numbers = #tpu.dot_dimension_numbers<[1], [0], [0], [1], [0, 0, 1, 1], [], []>} : vector<2x128xf32>, vector<128x8xf32>, vector<2x8xf32> -> vector<2x8xf32>
    %32 = vector.extract_strided_slice %31 {offsets = [0, 0], sizes = [1, 8], strides = [1, 1]} : vector<2x8xf32> to vector<1x8xf32>
    %cst_22 = arith.constant 0.001953125 : f32
    %33 = vector.broadcast %cst_22 : f32 to vector<1x8xf32>
    %34 = arith.mulf %32, %33 : vector<1x8xf32>
    %35 = vector.extract_strided_slice %31 {offsets = [1, 0], sizes = [1, 8], strides = [1, 1]} : vector<2x8xf32> to vector<1x8xf32>
    %cst_23 = arith.constant 0.001953125 : f32
    %36 = vector.broadcast %cst_23 : f32 to vector<1x8xf32>
    %37 = arith.mulf %35, %36 : vector<1x8xf32>
    %38 = arith.mulf %34, %34 : vector<1x8xf32>
    %39 = arith.subf %37, %38 : vector<1x8xf32>
    %c0_24 = arith.constant 0 : index
    %c0_25 = arith.constant 0 : index
    %40 = vector.load %arg2[%c0_24, %c0_25] : memref<1x8xf32, #tpu.memory_space<vmem>>, vector<1x8xf32>
    %cst_26 = arith.constant 9.99999974E-6 : f32
    %41 = vector.broadcast %cst_26 : f32 to vector<1x8xf32>
    %42 = arith.addf %39, %41 : vector<1x8xf32>
    %43 = math.rsqrt %42 : vector<1x8xf32>
    %44 = arith.mulf %40, %43 : vector<1x8xf32>
    %c0_27 = arith.constant 0 : index
    %c0_28 = arith.constant 0 : index
    %45 = vector.load %arg3[%c0_27, %c0_28] : memref<1x8xf32, #tpu.memory_space<vmem>>, vector<1x8xf32>
    %46 = arith.mulf %44, %34 : vector<1x8xf32>
    %47 = arith.subf %45, %46 : vector<1x8xf32>
    %48 = tpu.concatenate %44, %47 in 0 : vector<1x8xf32>, vector<1x8xf32> -> vector<2x8xf32>
    %cst_29 = arith.constant dense<0.000000e+00> : vector<2x128xf32>
    %49 = tpu.matmul %48, %3, %cst_29 {dimension_numbers = #tpu.dot_dimension_numbers<[1], [0], [0], [1], [0, 0, 1, 1], [], []>} : vector<2x8xf32>, vector<8x128xf32>, vector<2x128xf32> -> vector<2x128xf32>
    %50 = vector.extract_strided_slice %49 {offsets = [0, 0], sizes = [1, 128], strides = [1, 1]} : vector<2x128xf32> to vector<1x128xf32>
    %51 = vector.broadcast %50 : vector<1x128xf32> to vector<32x128xf32>
    %52 = arith.mulf %24, %51 : vector<32x128xf32>
    %53 = vector.extract_strided_slice %49 {offsets = [1, 0], sizes = [1, 128], strides = [1, 1]} : vector<2x128xf32> to vector<1x128xf32>
    %54 = vector.broadcast %53 : vector<1x128xf32> to vector<32x128xf32>
    %55 = arith.addf %52, %54 : vector<32x128xf32>
    %cst_30 = arith.constant 0.000000e+00 : f32
    %56 = vector.broadcast %cst_30 : f32 to vector<32x128xf32>
    %57 = arith.maximumf %55, %56 : vector<32x128xf32>
    %c1_i32_31 = arith.constant 1 : i32
    %58 = tpu.dynamic_rotate %57 by %c1_i32_31 dim 0 : vector<32x128xf32>, i32 -> vector<32x128xf32>
    %59 = vector.broadcast %1 : vector<32x1xf32> to vector<32x128xf32>
    %60 = arith.mulf %58, %59 : vector<32x128xf32>
    %c31_i32_32 = arith.constant 31 : i32
    %61 = tpu.dynamic_rotate %57 by %c31_i32_32 dim 0 : vector<32x128xf32>, i32 -> vector<32x128xf32>
    %62 = vector.broadcast %0 : vector<32x1xf32> to vector<32x128xf32>
    %63 = arith.mulf %61, %62 : vector<32x128xf32>
    %64 = arith.truncf %60 : vector<32x128xf32> to vector<32x128xbf16>
    %c0_33 = arith.constant 0 : index
    %c0_34 = arith.constant 0 : index
    %65 = vector.load %arg4[%c0_33, %c0_34] : memref<384x64xbf16, #tpu.memory_space<vmem>>, vector<128x64xbf16>
    %cst_35 = arith.constant dense<0.000000e+00> : vector<32x64xf32>
    %66 = tpu.matmul %64, %65, %cst_35 {dimension_numbers = #tpu.dot_dimension_numbers<[1], [0], [0], [1], [0, 0, 1, 1], [], []>} : vector<32x128xbf16>, vector<128x64xbf16>, vector<32x64xf32> -> vector<32x64xf32>
    %67 = arith.truncf %57 : vector<32x128xf32> to vector<32x128xbf16>
    %c128_36 = arith.constant 128 : index
    %c0_37 = arith.constant 0 : index
    %68 = vector.load %arg4[%c128_36, %c0_37] : memref<384x64xbf16, #tpu.memory_space<vmem>>, vector<128x64xbf16>
    %cst_38 = arith.constant dense<0.000000e+00> : vector<32x64xf32>
    %69 = tpu.matmul %67, %68, %cst_38 {dimension_numbers = #tpu.dot_dimension_numbers<[1], [0], [0], [1], [0, 0, 1, 1], [], []>} : vector<32x128xbf16>, vector<128x64xbf16>, vector<32x64xf32> -> vector<32x64xf32>
    %70 = arith.addf %66, %69 : vector<32x64xf32>
    %71 = arith.truncf %63 : vector<32x128xf32> to vector<32x128xbf16>
    %c256 = arith.constant 256 : index
    %c0_39 = arith.constant 0 : index
    %72 = vector.load %arg4[%c256, %c0_39] : memref<384x64xbf16, #tpu.memory_space<vmem>>, vector<128x64xbf16>
    %cst_40 = arith.constant dense<0.000000e+00> : vector<32x64xf32>
    %73 = tpu.matmul %71, %72, %cst_40 {dimension_numbers = #tpu.dot_dimension_numbers<[1], [0], [0], [1], [0, 0, 1, 1], [], []>} : vector<32x128xbf16>, vector<128x64xbf16>, vector<32x64xf32> -> vector<32x64xf32>
    %74 = arith.addf %70, %73 : vector<32x64xf32>
    %cst_41 = arith.constant dense<0.000000e+00> : vector<64xf32>
    %75 = vector.multi_reduction <add>, %74, %cst_41 [0] : vector<32x64xf32> to vector<64xf32>
    %76 = vector.shape_cast %75 : vector<64xf32> to vector<1x64xf32>
    %77 = arith.mulf %74, %74 : vector<32x64xf32>
    %cst_42 = arith.constant dense<0.000000e+00> : vector<64xf32>
    %78 = vector.multi_reduction <add>, %77, %cst_42 [0] : vector<32x64xf32> to vector<64xf32>
    %79 = vector.shape_cast %78 : vector<64xf32> to vector<1x64xf32>
    %80 = tpu.concatenate %76, %79 in 0 : vector<1x64xf32>, vector<1x64xf32> -> vector<2x64xf32>
    %cst_43 = arith.constant dense<0.000000e+00> : vector<2x4xf32>
    %81 = tpu.matmul %80, %4, %cst_43 {dimension_numbers = #tpu.dot_dimension_numbers<[1], [0], [0], [1], [0, 0, 1, 1], [], []>} : vector<2x64xf32>, vector<64x4xf32>, vector<2x4xf32> -> vector<2x4xf32>
    %82 = vector.extract_strided_slice %81 {offsets = [0, 0], sizes = [1, 4], strides = [1, 1]} : vector<2x4xf32> to vector<1x4xf32>
    %cst_44 = arith.constant 0.001953125 : f32
    %83 = vector.broadcast %cst_44 : f32 to vector<1x4xf32>
    %84 = arith.mulf %82, %83 : vector<1x4xf32>
    %85 = vector.extract_strided_slice %81 {offsets = [1, 0], sizes = [1, 4], strides = [1, 1]} : vector<2x4xf32> to vector<1x4xf32>
    %cst_45 = arith.constant 0.001953125 : f32
    %86 = vector.broadcast %cst_45 : f32 to vector<1x4xf32>
    %87 = arith.mulf %85, %86 : vector<1x4xf32>
    %88 = arith.mulf %84, %84 : vector<1x4xf32>
    %89 = arith.subf %87, %88 : vector<1x4xf32>
    %c0_46 = arith.constant 0 : index
    %c0_47 = arith.constant 0 : index
    %90 = vector.load %arg5[%c0_46, %c0_47] : memref<1x4xf32, #tpu.memory_space<vmem>>, vector<1x4xf32>
    %cst_48 = arith.constant 9.99999974E-6 : f32
    %91 = vector.broadcast %cst_48 : f32 to vector<1x4xf32>
    %92 = arith.addf %89, %91 : vector<1x4xf32>
    %93 = math.rsqrt %92 : vector<1x4xf32>
    %94 = arith.mulf %90, %93 : vector<1x4xf32>
    %c0_49 = arith.constant 0 : index
    %c0_50 = arith.constant 0 : index
    %95 = vector.load %arg6[%c0_49, %c0_50] : memref<1x4xf32, #tpu.memory_space<vmem>>, vector<1x4xf32>
    %96 = arith.mulf %94, %84 : vector<1x4xf32>
    %97 = arith.subf %95, %96 : vector<1x4xf32>
    %98 = tpu.concatenate %94, %97 in 0 : vector<1x4xf32>, vector<1x4xf32> -> vector<2x4xf32>
    %cst_51 = arith.constant dense<0.000000e+00> : vector<2x64xf32>
    %99 = tpu.matmul %98, %5, %cst_51 {dimension_numbers = #tpu.dot_dimension_numbers<[1], [0], [0], [1], [0, 0, 1, 1], [], []>} : vector<2x4xf32>, vector<4x64xf32>, vector<2x64xf32> -> vector<2x64xf32>
    %100 = vector.extract_strided_slice %99 {offsets = [0, 0], sizes = [1, 64], strides = [1, 1]} : vector<2x64xf32> to vector<1x64xf32>
    %101 = vector.broadcast %100 : vector<1x64xf32> to vector<32x64xf32>
    %102 = arith.mulf %74, %101 : vector<32x64xf32>
    %103 = vector.extract_strided_slice %99 {offsets = [1, 0], sizes = [1, 64], strides = [1, 1]} : vector<2x64xf32> to vector<1x64xf32>
    %104 = vector.broadcast %103 : vector<1x64xf32> to vector<32x64xf32>
    %105 = arith.addf %102, %104 : vector<32x64xf32>
    %cst_52 = arith.constant 0.000000e+00 : f32
    %106 = vector.broadcast %cst_52 : f32 to vector<32x64xf32>
    %107 = arith.maximumf %105, %106 : vector<32x64xf32>
    %c1_i32_53 = arith.constant 1 : i32
    %108 = tpu.dynamic_rotate %107 by %c1_i32_53 dim 0 : vector<32x64xf32>, i32 -> vector<32x64xf32>
    %109 = vector.broadcast %1 : vector<32x1xf32> to vector<32x64xf32>
    %110 = arith.mulf %108, %109 : vector<32x64xf32>
    %c31_i32_54 = arith.constant 31 : i32
    %111 = tpu.dynamic_rotate %107 by %c31_i32_54 dim 0 : vector<32x64xf32>, i32 -> vector<32x64xf32>
    %112 = vector.broadcast %0 : vector<32x1xf32> to vector<32x64xf32>
    %113 = arith.mulf %111, %112 : vector<32x64xf32>
    %114 = arith.truncf %110 : vector<32x64xf32> to vector<32x64xbf16>
    %c0_55 = arith.constant 0 : index
    %c0_56 = arith.constant 0 : index
    %115 = vector.load %arg1[%c0_55, %c0_56] : memref<192x128xbf16, #tpu.memory_space<vmem>>, vector<64x128xbf16>
    %cst_57 = arith.constant dense<0.000000e+00> : vector<32x128xf32>
    %116 = tpu.matmul %114, %115, %cst_57 {dimension_numbers = #tpu.dot_dimension_numbers<[1], [0], [0], [1], [0, 0, 1, 1], [], []>} : vector<32x64xbf16>, vector<64x128xbf16>, vector<32x128xf32> -> vector<32x128xf32>
    %117 = arith.truncf %107 : vector<32x64xf32> to vector<32x64xbf16>
    %c64_58 = arith.constant 64 : index
    %c0_59 = arith.constant 0 : index
    %118 = vector.load %arg1[%c64_58, %c0_59] : memref<192x128xbf16, #tpu.memory_space<vmem>>, vector<64x128xbf16>
    %cst_60 = arith.constant dense<0.000000e+00> : vector<32x128xf32>
    %119 = tpu.matmul %117, %118, %cst_60 {dimension_numbers = #tpu.dot_dimension_numbers<[1], [0], [0], [1], [0, 0, 1, 1], [], []>} : vector<32x64xbf16>, vector<64x128xbf16>, vector<32x128xf32> -> vector<32x128xf32>
    %120 = arith.addf %116, %119 : vector<32x128xf32>
    %121 = arith.truncf %113 : vector<32x64xf32> to vector<32x64xbf16>
    %c128_61 = arith.constant 128 : index
    %c0_62 = arith.constant 0 : index
    %122 = vector.load %arg1[%c128_61, %c0_62] : memref<192x128xbf16, #tpu.memory_space<vmem>>, vector<64x128xbf16>
    %cst_63 = arith.constant dense<0.000000e+00> : vector<32x128xf32>
    %123 = tpu.matmul %121, %122, %cst_63 {dimension_numbers = #tpu.dot_dimension_numbers<[1], [0], [0], [1], [0, 0, 1, 1], [], []>} : vector<32x64xbf16>, vector<64x128xbf16>, vector<32x128xf32> -> vector<32x128xf32>
    %124 = arith.addf %120, %123 : vector<32x128xf32>
    %cst_64 = arith.constant dense<0.000000e+00> : vector<128xf32>
    %125 = vector.multi_reduction <add>, %124, %cst_64 [0] : vector<32x128xf32> to vector<128xf32>
    %126 = vector.shape_cast %125 : vector<128xf32> to vector<1x128xf32>
    %127 = arith.mulf %124, %124 : vector<32x128xf32>
    %cst_65 = arith.constant dense<0.000000e+00> : vector<128xf32>
    %128 = vector.multi_reduction <add>, %127, %cst_65 [0] : vector<32x128xf32> to vector<128xf32>
    %129 = vector.shape_cast %128 : vector<128xf32> to vector<1x128xf32>
    %130 = tpu.concatenate %126, %129 in 0 : vector<1x128xf32>, vector<1x128xf32> -> vector<2x128xf32>
    %cst_66 = arith.constant dense<0.000000e+00> : vector<2x8xf32>
    %131 = tpu.matmul %130, %2, %cst_66 {dimension_numbers = #tpu.dot_dimension_numbers<[1], [0], [0], [1], [0, 0, 1, 1], [], []>} : vector<2x128xf32>, vector<128x8xf32>, vector<2x8xf32> -> vector<2x8xf32>
    %132 = vector.extract_strided_slice %131 {offsets = [0, 0], sizes = [1, 8], strides = [1, 1]} : vector<2x8xf32> to vector<1x8xf32>
    %cst_67 = arith.constant 0.001953125 : f32
    %133 = vector.broadcast %cst_67 : f32 to vector<1x8xf32>
    %134 = arith.mulf %132, %133 : vector<1x8xf32>
    %135 = vector.extract_strided_slice %131 {offsets = [1, 0], sizes = [1, 8], strides = [1, 1]} : vector<2x8xf32> to vector<1x8xf32>
    %cst_68 = arith.constant 0.001953125 : f32
    %136 = vector.broadcast %cst_68 : f32 to vector<1x8xf32>
    %137 = arith.mulf %135, %136 : vector<1x8xf32>
    %138 = arith.mulf %134, %134 : vector<1x8xf32>
    %139 = arith.subf %137, %138 : vector<1x8xf32>
    %c0_69 = arith.constant 0 : index
    %c0_70 = arith.constant 0 : index
    %140 = vector.load %arg2[%c0_69, %c0_70] : memref<1x8xf32, #tpu.memory_space<vmem>>, vector<1x8xf32>
    %cst_71 = arith.constant 9.99999974E-6 : f32
    %141 = vector.broadcast %cst_71 : f32 to vector<1x8xf32>
    %142 = arith.addf %139, %141 : vector<1x8xf32>
    %143 = math.rsqrt %142 : vector<1x8xf32>
    %144 = arith.mulf %140, %143 : vector<1x8xf32>
    %c0_72 = arith.constant 0 : index
    %c0_73 = arith.constant 0 : index
    %145 = vector.load %arg3[%c0_72, %c0_73] : memref<1x8xf32, #tpu.memory_space<vmem>>, vector<1x8xf32>
    %146 = arith.mulf %144, %134 : vector<1x8xf32>
    %147 = arith.subf %145, %146 : vector<1x8xf32>
    %148 = tpu.concatenate %144, %147 in 0 : vector<1x8xf32>, vector<1x8xf32> -> vector<2x8xf32>
    %cst_74 = arith.constant dense<0.000000e+00> : vector<2x128xf32>
    %149 = tpu.matmul %148, %3, %cst_74 {dimension_numbers = #tpu.dot_dimension_numbers<[1], [0], [0], [1], [0, 0, 1, 1], [], []>} : vector<2x8xf32>, vector<8x128xf32>, vector<2x128xf32> -> vector<2x128xf32>
    %150 = vector.extract_strided_slice %149 {offsets = [0, 0], sizes = [1, 128], strides = [1, 1]} : vector<2x128xf32> to vector<1x128xf32>
    %151 = vector.broadcast %150 : vector<1x128xf32> to vector<32x128xf32>
    %152 = arith.mulf %124, %151 : vector<32x128xf32>
    %153 = vector.extract_strided_slice %149 {offsets = [1, 0], sizes = [1, 128], strides = [1, 1]} : vector<2x128xf32> to vector<1x128xf32>
    %154 = vector.broadcast %153 : vector<1x128xf32> to vector<32x128xf32>
    %155 = arith.addf %152, %154 : vector<32x128xf32>
    %cst_75 = arith.constant 0.000000e+00 : f32
    %156 = vector.broadcast %cst_75 : f32 to vector<32x128xf32>
    %157 = arith.maximumf %155, %156 : vector<32x128xf32>
    %c0_76 = arith.constant 0 : index
    %c0_77 = arith.constant 0 : index
    %158 = vector.load %arg13[%c0_76, %c0_77] : memref<32x128xf32, #tpu.memory_space<vmem>>, vector<32x128xf32>
    tpu.vector_store %arg13[%c0_76, %c0_77], %157 {strides = array<i32>} : memref<32x128xf32, #tpu.memory_space<vmem>>, vector<32x128xf32>,
    return
  }
}

</mosaic_0001>

<bundles_post_ra>
// kernel: bottleneck_block.1
= control target key start
LH: loop header
LB: loop body
LE: loop exit
PB: predicated region body
PF: predicated region fallthrough
CT: control target
= control target key end

     0   :  { %v2243_v0 = vmov 0   ;;  %v91_v6 = vlaneseq  ;;  %vm207_vm0 = vcmask 523264   ;;  %v2244_v36 = vmov 0.0|0.0   ;;  %s2906_s8 = inlined_call_operand.vmem [shape: f32[32,1], index: 8, kind: input, shape index: {}]   ;;  %s2907_s1 = inlined_call_operand.vmem [shape: bf16[192,128], index: 1, kind: input, shape index: {}]   ;;  %s2908_s7 = inlined_call_operand.vmem [shape: f32[32,1], index: 7, kind: input, shape index: {}]   ;;  %s2909_s0 = inlined_call_operand.vmem [shape: bf16[32,64], index: 0, kind: input, shape index: {}]   ;;  %s2910_s9 = inlined_call_operand.vmem [shape: f32[128,8], index: 9, kind: input, shape index: {}]   ;;  %s2911_s10 = inlined_call_operand.vmem [shape: f32[8,128], index: 10, kind: input, shape index: {}]   ;;  %s2912_s4 = inlined_call_operand.vmem [shape: bf16[384,64], index: 4, kind: input, shape index: {}]   ;;  %s2913_s2 = inlined_call_operand.vmem [shape: f32[1,8], index: 2, kind: input, shape index: {}]   ;;  %s2914_s3 = inlined_call_operand.vmem [shape: f32[1,8], index: 3, kind: input, shape index: {}]   ;;  %s2915_s11 = inlined_call_operand.vmem [shape: f32[64,4], index: 11, kind: input, shape index: {}]   ;;  %s2916_s12 = inlined_call_operand.vmem [shape: f32[4,64], index: 12, kind: input, shape index: {}]   ;;  %s2917_s5 = inlined_call_operand.vmem [shape: f32[1,4], index: 5, kind: input, shape index: {}]   ;;  %s2918_s6 = inlined_call_operand.vmem [shape: f32[1,4], index: 6, kind: input, shape index: {}]   ;;  %s2919_s13 = inlined_call_operand.vmem [shape: f32[32,128], index: 13, kind: output, shape index: {}]  }
   0x1   :  { %2196 = vset.pattern.permute.xlu1 %v2243_v0  ;;  %2195 = vset.pattern.permute.xlu0 %v2243_v0  ;;  %v51_v1 = vld [vmem:[%s2906_s8 + $0x10] sm:$0xff]  ;;  %v49_v2 = vld [vmem:[%s2906_s8] sm:$0xff]  ;;  %v52_v3 = vld [vmem:[%s2906_s8 + $0x18] sm:$0xff]  ;;  %vm2245_vm3 = vmmov 0   ;;  %vm457_vm4 = vcmask 1040384   ;;  %vm566_vm5 = vcmask 64512  }
   0x2   :  { %110 = vperm.xlu1 %2196, %v51_v1   ;;  %100 = vperm.xlu0 %2195, %v49_v2   ;;  %v50_v4 = vld [vmem:[%s2906_s8 + $0x8] sm:$0xff]  ;;  %v2333_v5 = vld [vmem:[%s2907_s1 + $0x20] sm:$0xff]   ;;  %v2351_v13 = vshrl.u32 %v91_v6, 7  ;;  %v2357_v14 = vld [vmem:[%s2907_s1 + $0x30] sm:$0xff]   ;;  %vm1178_vm6 = vcmask 1043456   ;;  %vm1174_vm7 = vcmask 31744  }
   0x3   :  { %v2338_v7 = vld [vmem:[%s2907_s1 + $0x28] sm:$0xff]   ;;  %v45_v9 = vld [vmem:[%s2908_s7] sm:$0xff]  ;;  %1870 = vmatprep.subr.bf16.mxu0 %v2333_v5  ;;  %v48_v15 = vld [vmem:[%s2908_s7 + $0x18] sm:$0xff]  ;;  %2106 = vmatprep.subr.bf16.mxu1 %v2244_v36 }
   0x4   :  { %v46_v8 = vld [vmem:[%s2908_s7 + $0x8] sm:$0xff]  ;;  %v79_v10 = vld [vmem:[%s2909_s0] sm:$0xff]   ;;  %1871 = vmatpush3.bf16.msra.mxu0 %v2333_v5  ;;  %v47_v16 = vld [vmem:[%s2908_s7 + $0x10] sm:$0xff]  ;;  %vm93_vm1 = vcmp.lt.s32.totalorder %v2351_v13, 1  ;;  %vm126_vm2 = vcmp.lt.s32.totalorder %v2351_v13, 7 }
   0x5   :  { %v83_v11 = vunpack.c.l.bf16 %v79_v10  ;;  %v84_v12 = vunpack.c.h.bf16 %v79_v10  ;;  %1872 = vmatprep.subr.bf16.mxu0 %v2338_v7  ;;  %v81_v20 = vld [vmem:[%s2909_s0 + $0x8] sm:$0xff]   ;;  %1878 = vmatprep.mubr.msk.bf16.mxu0 %vm207_vm0, %v79_v10  ;;  %v2378_v23 = vld [vmem:[%s2907_s1 + $0x38] sm:$0xff]   ;;  %v2394_v33 = vld [vmem:[%s2907_s1] sm:$0xff]  }
   0x6   :  { %115 = vperm.xlu1 %2196, %v52_v3   ;;  %105 = vperm.xlu0 %2195, %v50_v4   ;;  %v85_v21 = vunpack.c.l.bf16 %v81_v20  ;;  %v86_v22 = vunpack.c.h.bf16 %v81_v20  ;;  %v2401_v34 = vld [vmem:[%s2907_s1 + $0x8] sm:$0xff]   ;;  %v2409_v35 = vld [vmem:[%s2907_s1 + $0x10] sm:$0xff]   ;;  %v53_v37 = vld [vmem:[%s2910_s9] sm:$0xff] }
   0x7   :  { %v87_v17 = vrot.slane %v83_v11, 7  ;;  %v88_v18 = vrot.slane %v84_v12, 7  ;;  %v2365_v19 = vrot.slane %v84_v12, 1  ;;  %v122_v27 = vrot.slane %v83_v11, 1  ;;  %v54_v38 = vld [vmem:[%s2910_s9 + $0x8] sm:$0xff]  ;;  %v55_v39 = vld [vmem:[%s2910_s9 + $0x10] sm:$0xff] }
   0x8   :  { %1873 = vmatpush3.bf16.msra.mxu0 %v2338_v7  ;;  %v89_v24 = vrot.slane %v85_v21, 7  ;;  %v90_v25 = vrot.slane %v86_v22, 7  ;;  %v124_v26 = vrot.slane %v85_v21, 1  ;;  %v125_v28 = vrot.slane %v86_v22, 1  ;;  %v2426_v40 = vld [vmem:[%s2907_s1 + $0x18] sm:$0xff]   ;;  %v2442_v44 = vld [vmem:[%s2907_s1 + $0x40] sm:$0xff]  }
   0x9   :  { %1874 = vmatprep.subr.bf16.mxu0 %v2357_v14  ;;  %v2428_v41 = vpack.c.bf16 %v54_v38, %v53_v37  ;;  %v56_v42 = vld [vmem:[%s2910_s9 + $0x18] sm:$0xff]  ;;  %v96_v48 = vsel %vm93_vm1, %v87_v17, %v88_v18  ;;  %v129_v55 = vsel %vm126_vm2, %v122_v27, %v2365_v19  ;;  %v2474_v60 = vld [vmem:[%s2907_s1 + $0x48] sm:$0xff]   ;;  %v2491_v3 = vld [vmem:[%s2907_s1 + $0x50] sm:$0xff]  }
   0xa   :  { %138 = vperm.xlu1 %2196, %v46_v8   ;;  %133 = vperm.xlu0 %2195, %v45_v9   ;;  %v95_v29 = vsel %vm93_vm1, %v88_v18, %v89_v24  ;;  %v97_v30 = vsel %vm93_vm1, %v90_v25, %v87_v17  ;;  %v128_v31 = vsel %vm126_vm2, %v2365_v19, %v124_v26  ;;  %v2501_v9 = vld [vmem:[%s2907_s1 + $0x58] sm:$0xff]   ;;  %v57_v10 = vld [vmem:[%s2910_s9 + $0x20] sm:$0xff]  ;;  %v58_v11 = vld [vmem:[%s2910_s9 + $0x28] sm:$0xff] }
   0xb   :  { %v130_v32 = vsel %vm126_vm2, %v125_v28, %v122_v27  ;;  %2108 = vmatpush3.bf16.msra.mxu1 %v2428_v41  ;;  %v2434_v43 = vpack.c.bf16 %v56_v42, %v55_v39  ;;  %v94_v47 = vsel %vm93_vm1, %v89_v24, %v90_v25  ;;  %v127_v63 = vsel %vm126_vm2, %v124_v26, %v125_v28  ;;  %v61_v18 = vld [vmem:[%s2910_s9 + $0x40] sm:$0xff]  ;;  %v62_v19 = vld [vmem:[%s2910_s9 + $0x48] sm:$0xff]  ;;  %v63_v21 = vld [vmem:[%s2910_s9 + $0x50] sm:$0xff] }
   0xc   :  { %1875 = vmatpush3.bf16.msra.mxu0 %v2357_v14  ;;  %2109 = vmatprep.subr.bf16.mxu1 %v2244_v36  ;;  %v2514_v12 = vpack.c.bf16 %v58_v11, %v57_v10  ;;  %v64_v22 = vld [vmem:[%s2910_s9 + $0x58] sm:$0xff]  ;;  %v65_v25 = vld [vmem:[%s2910_s9 + $0x60] sm:$0xff]  ;;  %v66_v26 = vld [vmem:[%s2910_s9 + $0x68] sm:$0xff]  ;;  %v2246_v27 = vmov 0.0  }
   0xd   :  { %1876 = vmatprep.subr.bf16.mxu0 %v2378_v23  ;;  %v2544_v24 = vpack.c.bf16 %v64_v22, %v63_v21  ;;  %1938 = vmatprep.mubr.msk.f32.mxu1 %vm2245_vm3, %v2246_v27  ;;  %v2557_v28 = vpack.c.bf16 %v66_v26, %v65_v25  ;;  %v2598_v21 = vld [vmem:[%s2911_s10] sm:$0xff] }
   0xe   :  { %148 = vperm.xlu1 %2196, %v48_v15   ;;  %143 = vperm.xlu0 %2195, %v47_v16   ;;  %v59_v15 = vld [vmem:[%s2910_s9 + $0x30] sm:$0xff]  ;;  %v60_v16 = vld [vmem:[%s2910_s9 + $0x38] sm:$0xff]  ;;  %v2211_v22 = vld [vmem:[%s2912_s4 + $0x40] sm:$0xff]  }
   0xf   :  { %2111 = vmatpush3.bf16.msra.mxu1 %v2434_v43  ;;  %v2524_v17 = vpack.c.bf16 %v60_v16, %v59_v15 }
  0x10   :  { %1877 = vmatpush3.bf16.msra.mxu0 %v2378_v23  ;;  %2112 = vmatprep.subr.bf16.mxu1 %v2244_v36 }
  0x11   :  { %1882 = vmatprep.subr.bf16.mxu0 %v2394_v33 }
  0x13   :  { %1879 = vmatmul.mubr.msk.bf16.vlgmr.msra.gmra.mrb[0].mxu0 %vm207_vm0, %v81_v20  ;;  %2114 = vmatpush3.bf16.msra.mxu1 %v2514_v12  ;;  %v2534_v20 = vpack.c.bf16 %v62_v19, %v61_v18 }
  0x14   :  { %1883 = vmatpush3.bf16.msra.mxu0 %v2394_v33  ;;  %2115 = vmatprep.subr.bf16.mxu1 %v2244_v36 }
  0x15   :  { %1884 = vmatprep.subr.bf16.mxu0 %v2401_v34 }
  0x17   :  { %2117 = vmatpush3.bf16.msra.mxu1 %v2524_v17 }
  0x18   :  { %1885 = vmatpush3.bf16.msra.mxu0 %v2401_v34  ;;  %2118 = vmatprep.subr.bf16.mxu1 %v2244_v36 }
  0x19   :  { %1886 = vmatprep.subr.bf16.mxu0 %v2409_v35 }
  0x1b   :  { %2120 = vmatpush3.bf16.msra.mxu1 %v2534_v20 }
  0x1c   :  { %1887 = vmatpush3.bf16.msra.mxu0 %v2409_v35  ;;  %2121 = vmatprep.subr.bf16.mxu1 %v2244_v36 }
  0x1d   :  { %1888 = vmatprep.subr.bf16.mxu0 %v2426_v40 }
  0x1f   :  { %2123 = vmatpush3.bf16.msra.mxu1 %v2544_v24 }
  0x20   :  { %1889 = vmatpush3.bf16.msra.mxu0 %v2426_v40  ;;  %2124 = vmatprep.subr.bf16.mxu1 %v2244_v36 }
  0x21   :  { %1894 = vmatprep.subr.bf16.mxu0 %v2442_v44 }
  0x23   :  { %2126 = vmatpush3.bf16.msra.mxu1 %v2557_v28 }
  0x24   :  { %2127 = vmatprep.subr.bf16.mxu1 %v2244_v36 }
  0x81   :  { %v2448_v45 = vpop.permute.xlu1 %110  ;;  %v2450_v46 = vpop.permute.xlu0 %100 }
  0x82   :  { %v120_v51 = vmul.f32 %v2448_v45, %v95_v29  ;;  %v118_v52 = vmul.f32 %v2450_v46, %v97_v30  ;;  %v67_v29 = vld [vmem:[%s2910_s9 + $0x70] sm:$0xff]  ;;  %v68_v30 = vld [vmem:[%s2910_s9 + $0x78] sm:$0xff] }
  0x85   :  { %v2456_v49 = vpop.permute.xlu1 %115  ;;  %v2458_v50 = vpop.permute.xlu0 %105 }
  0x86   :  { %v121_v53 = vmul.f32 %v2456_v49, %v94_v47  ;;  %v119_v54 = vmul.f32 %v2458_v50, %v96_v48 }
  0x88   :  { %v156_v56 = vpack.c.bf16 %v121_v53, %v120_v51  ;;  %v155_v57 = vpack.c.bf16 %v119_v54, %v118_v52 }
  0x89   :  { %v2467_v58 = vpop.permute.xlu1 %138  ;;  %v2469_v59 = vpop.permute.xlu0 %133 }
  0x8a   :  { %v152_v61 = vmul.f32 %v2467_v58, %v128_v31  ;;  %v151_v62 = vmul.f32 %v2469_v59, %v129_v55  ;;  %1890 = vmatprep.mubr.msk.bf16.mxu0 %vm207_vm0, %v155_v57  ;;  %v2567_v31 = vpack.c.bf16 %v68_v30, %v67_v29 }
  0x8b   :  { %1891 = vmatmul.mubr.msk.bf16.vlgmr.msra.gmra.mrb[0].mxu0 %vm207_vm0, %v156_v56 }
  0x8c   :  { %v342_v0 = vpack.c.bf16 %v152_v61, %v151_v62  ;;  %1895 = vmatpush3.bf16.msra.mxu0 %v2442_v44  ;;  %2129 = vmatpush3.bf16.msra.mxu1 %v2567_v31 }
  0x8d   :  { %v2483_v1 = vpop.permute.xlu1 %148  ;;  %v2485_v2 = vpop.permute.xlu0 %143  ;;  %1896 = vmatprep.subr.bf16.mxu0 %v2474_v60  ;;  %1941 = vmatprep.subr.mxu1 %v2246_v27 }
  0x8e   :  { %v154_v4 = vmul.f32 %v2483_v1, %v130_v32  ;;  %v153_v6 = vmul.f32 %v2485_v2, %v127_v63  ;;  %1902 = vmatprep.mubr.msk.bf16.mxu0 %vm207_vm0, %v342_v0 }
  0x90   :  { %v343_v8 = vpack.c.bf16 %v154_v4, %v153_v6  ;;  %1897 = vmatpush3.bf16.msra.mxu0 %v2474_v60 }
  0x91   :  { %1898 = vmatprep.subr.bf16.mxu0 %v2491_v3 }
  0x94   :  { %1899 = vmatpush3.bf16.msra.mxu0 %v2491_v3 }
  0x95   :  { %1900 = vmatprep.subr.bf16.mxu0 %v2501_v9 }
  0x98   :  { %1901 = vmatpush3.bf16.msra.mxu0 %v2501_v9 }
  0x99   :  { %2130 = vmatprep.subr.bf16.mxu0 %v2244_v36 }
  0x9b   :  { %1903 = vmatmul.mubr.msk.bf16.vlgmr.msra.gmra.mrb[0].mxu0 %vm207_vm0, %v343_v8 }
  0x9c   :  { %2022 = vmatprep.mubr.msk.f32.mxu0 %vm2245_vm3, %v2246_v27 }
 0x16e   :  { %v2572_v32 = vpop.f32.mrb[0].mxu0 }
 0x16f   :  { %v2574_v37 = vpop.f32.mrb[1].mxu0  ;;  %v446_v51 = vmul.f32 %v2572_v32, %v2572_v32 }
 0x170   :  { %v2576_v38 = vpop.f32.mrb[2].mxu0  ;;  %v444_v42 = vmul.f32 %v2574_v37, %v2574_v37 }
 0x171   :  { %v2578_v39 = vpop.f32.mrb[3].mxu0  ;;  %v447_v54 = vmul.f32 %v2576_v38, %v2576_v38 }
 0x172   :  { %v435_v47 = vadd.f32 %v2578_v39, %v2574_v37  ;;  %v445_v48 = vmul.f32 %v2578_v39, %v2578_v39 }
 0x174   :  { %v436_v52 = vadd.f32 %v2572_v32, %v435_v47  ;;  %v448_v53 = vadd.f32 %v445_v48, %v444_v42 }
 0x176   :  { %v437_v55 = vadd.f32 %v2576_v38, %v436_v52  ;;  %v449_v56 = vadd.f32 %v448_v53, %v446_v51  ;;  %v2247_v51 = vmov 1966171168  }
 0x177   :  { %v540_v52 = vunpack.c.l.s4 %v2247_v51 }
 0x178   :  { %v438_v57 = vrot.slane %v437_v55, 4  ;;  %v450_v61 = vadd.f32 %v449_v56, %v447_v54 }
 0x179   :  { %v541_v53 = vunpack.c.0.s8 %v540_v52 }
 0x17a   :  { %v439_v62 = vadd.f32 %v438_v57, %v437_v55  ;;  %v451_v63 = vrot.slane %v450_v61, 4 }
 0x17b   :  { %v2605_v54 = vsub.s32 %v541_v53, %v2351_v13 }
 0x17c   :  { %v440_v0 = vrot.slane %v439_v62, 2  ;;  %v452_v4 = vadd.f32 %v451_v63, %v450_v61  ;;  %v2611_v61 = vld [vmem:[%s2913_s2] sm:$0x1] }
 0x17e   :  { %v441_v6 = vadd.f32 %v440_v0, %v439_v62  ;;  %v453_v8 = vrot.slane %v452_v4, 2  ;;  %v2618_v0 = vld [vmem:[%s2914_s3] sm:$0x1] }
 0x180   :  { %v442_v10 = vrot.slane %v441_v6, 1  ;;  %v454_v11 = vadd.f32 %v453_v8, %v452_v4 }
 0x182   :  { %v455_v15 = vrot.slane %v454_v11, 1  ;;  %v443_v16 = vadd.f32 %v442_v10, %v441_v6  ;;  %v2621_v6 = vsub.s32 0, %v2351_v13 }
 0x184   :  { %v456_v18 = vadd.f32 %v455_v15, %v454_v11  ;;  %v2212_v11 = vld [vmem:[%s2912_s4 + $0x48] sm:$0xff]  }
 0x186   :  { %v458_v19 = vsel %vm457_vm4, %v443_v16, %v456_v18  ;;  %v2213_v16 = vld [vmem:[%s2912_s4 + $0x50] sm:$0xff]   ;;  %v2214_v18 = vld [vmem:[%s2912_s4 + $0x58] sm:$0xff]  }
 0x187   :  { %1939 = vmatmul.mubr.f32.vlgmr.msra.gmra.mrb[0].mxu1 %v458_v19  ;;  %v2215_v19 = vld [vmem:[%s2912_s4 + $0x60] sm:$0xff]  }
 0x188   :  { %1943 = vmatprep.mubr.msk.f32.mxu1 %vm2245_vm3, %v2246_v27  ;;  %1942 = vmatpush3.msra.mxu1 %v2598_v21 }
 0x189   :  { %1946 = vmatprep.subr.bf16.mxu1 %v2211_v22 }
 0x25a   :  { %v525_v25 = vpop.f32.mrb[0].mxu1 }
 0x25b   :  { %v529_v26 = vmul.f32 0.001953125, %v525_v25  ;;  %v1940_v29 = vpop.f32.mrb[1].mxu1  ;;  %v2217_v25 = vld [vmem:[%s2912_s4 + $0x70] sm:$0xff]  }
 0x25c   :  { %v2219_v29 = vld [vmem:[%s2912_s4] sm:$0xff]  }
 0x25d   :  { %v530_v30 = vmul.f32 %v529_v26, %v529_v26 }
 0x25f   :  { %v532_v42 = vrot.slane %v530_v30, 7  ;;  %v2652_v30 = vsub.s32 1, %v2351_v13 }
 0x261   :  { %v534_v47 = vsub.f32 %v529_v26, %v532_v42 }
 0x263   :  { %v536_v48 = vadd.f32 1e-05, %v534_v47 }
 0x265   :  { %2237 = vrsqrt.f32 %v536_v48 }
 0x26f   :  { %v2238_v55 = vpop.eup %2237 }
 0x270   :  { %v545_v56 = vrot.slane %v2238_v55, %v2605_v54 }
 0x272   :  { %v546_v57 = vcombine.high %v545_v56, %v545_v56 }
 0x274   :  { %v553_v62 = vrot.slane %v546_v57, %v2605_v54 }
 0x276   :  { %v555_v63 = vmul.f32 %v553_v62, %v2611_v61 }
 0x278   :  { %v557_v4 = vmul.f32 %v555_v63, %v529_v26  ;;  %v2218_v26 = vld [vmem:[%s2912_s4 + $0x78] sm:$0xff]  }
 0x27a   :  { %v558_v8 = vsub.f32 %v2618_v0, %v557_v4 }
 0x27c   :  { %v563_v10 = vrot.slane %v558_v8, %v2621_v6 }
 0x27e   :  { %v565_v15 = vsel %vm457_vm4, %v555_v63, %v563_v10 }
 0x27f   :  { %1944 = vmatmul.mubr.msk.f32.vlgmr.msra.gmra.mrb[2].mxu1 %vm566_vm5, %v565_v15 }
 0x280   :  { %1947 = vmatpush3.bf16.msra.mxu1 %v2211_v22  ;;  %v2216_v22 = vld [vmem:[%s2912_s4 + $0x68] sm:$0xff]  }
 0x281   :  { %1948 = vmatprep.subr.bf16.mxu1 %v2212_v11 }
 0x284   :  { %1949 = vmatpush3.bf16.msra.mxu1 %v2212_v11 }
 0x285   :  { %1950 = vmatprep.subr.bf16.mxu1 %v2213_v16 }
 0x288   :  { %1951 = vmatpush3.bf16.msra.mxu1 %v2213_v16 }
 0x289   :  { %1952 = vmatprep.subr.bf16.mxu1 %v2214_v18 }
 0x28c   :  { %1953 = vmatpush3.bf16.msra.mxu1 %v2214_v18 }
 0x28d   :  { %1954 = vmatprep.subr.bf16.mxu1 %v2215_v19 }
 0x290   :  { %1955 = vmatpush3.bf16.msra.mxu1 %v2215_v19 }
 0x291   :  { %1956 = vmatprep.subr.bf16.mxu1 %v2216_v22 }
 0x294   :  { %1957 = vmatpush3.bf16.msra.mxu1 %v2216_v22 }
 0x295   :  { %1958 = vmatprep.subr.bf16.mxu1 %v2217_v25 }
 0x298   :  { %1959 = vmatpush3.bf16.msra.mxu1 %v2217_v25 }
 0x299   :  { %1960 = vmatprep.subr.bf16.mxu1 %v2218_v26 }
 0x29c   :  { %1961 = vmatpush3.bf16.msra.mxu1 %v2218_v26 }
 0x29d   :  { %1966 = vmatprep.subr.bf16.mxu1 %v2219_v29 }
 0x352   :  { %v636_v42 = vpop.f32.mrb[2].mxu1 }
 0x353   :  { %v643_v47 = vrot.slane %v636_v42, %v2621_v6  ;;  %v1945_v48 = vpop.f32.mrb[3].mxu1  ;;  %v651_v51 = vrot.slane %v636_v42, %v2652_v30 }
 0x355   :  { %v644_v52 = vmul.f32 %v643_v47, %v2574_v37  ;;  %v645_v53 = vmul.f32 %v643_v47, %v2578_v39  ;;  %v646_v55 = vmul.f32 %v2572_v32, %v643_v47  ;;  %v647_v56 = vmul.f32 %v2576_v38, %v643_v47  ;;  %v2220_v37 = vld [vmem:[%s2912_s4 + $0x8] sm:$0xff]  }
 0x357   :  { %v654_v57 = vadd.f32 %v651_v51, %v646_v55  ;;  %v655_v62 = vadd.f32 %v651_v51, %v647_v56  ;;  %v652_v63 = vadd.f32 %v651_v51, %v644_v52  ;;  %v653_v4 = vadd.f32 %v651_v51, %v645_v53 }
 0x359   :  { %v658_v8 = vmax.f32 %v654_v57, 0.0  ;;  %v659_v10 = vmax.f32 %v655_v62, 0.0  ;;  %v656_v11 = vmax.f32 %v652_v63, 0.0  ;;  %v657_v15 = vmax.f32 %v653_v4, 0.0  ;;  %v2221_v62 = vld [vmem:[%s2912_s4 + $0x10] sm:$0xff]  }
 0x35b   :  { %v662_v16 = vrot.slane %v658_v8, 7  ;;  %v675_v18 = vrot.slane %v659_v10, 1  ;;  %v702_v19 = vpack.c.bf16 %v657_v15, %v656_v11  ;;  %v703_v22 = vpack.c.bf16 %v659_v10, %v658_v8 }
 0x35c   :  { %v660_v39 = vrot.slane %v656_v11, 7  ;;  %v661_v32 = vrot.slane %v657_v15, 7  ;;  %v663_v25 = vrot.slane %v659_v10, 7  ;;  %v672_v38 = vrot.slane %v656_v11, 1 }
 0x35d   :  { %1962 = vmatprep.mubr.bf16.mxu1 %v702_v19  ;;  %v673_v26 = vrot.slane %v657_v15, 1  ;;  %v674_v42 = vrot.slane %v658_v8, 1 }
 0x35e   :  { %1963 = vmatmul.mubr.bf16.vlgmr.msra.gmra.mrb[4].mxu1 %v703_v22  ;;  %v666_v47 = vsel %vm93_vm1, %v660_v39, %v661_v32  ;;  %v667_v48 = vsel %vm93_vm1, %v663_v25, %v660_v39  ;;  %v664_v51 = vsel %vm93_vm1, %v662_v16, %v663_v25  ;;  %v665_v52 = vsel %vm93_vm1, %v661_v32, %v662_v16  ;;  %v2222_v32 = vld [vmem:[%s2912_s4 + $0x18] sm:$0xff]  }
 0x35f   :  { %1967 = vmatpush3.bf16.msra.mxu1 %v2219_v29  ;;  %v668_v53 = vmul.f32 %v667_v48, %v2450_v46  ;;  %v669_v55 = vmul.f32 %v666_v47, %v2458_v50  ;;  %v670_v56 = vmul.f32 %v665_v52, %v2448_v45  ;;  %v671_v57 = vmul.f32 %v664_v51, %v2456_v49  ;;  %v2228_v47 = vld [vmem:[%s2912_s4 + $0x88] sm:$0xff]   ;;  %v2229_v48 = vld [vmem:[%s2912_s4 + $0x90] sm:$0xff]   ;;  %v2230_v51 = vld [vmem:[%s2912_s4 + $0x98] sm:$0xff]  }
 0x360   :  { %1968 = vmatprep.subr.bf16.mxu1 %v2220_v37  ;;  %v677_v63 = vsel %vm126_vm2, %v673_v26, %v674_v42  ;;  %v678_v4 = vsel %vm126_vm2, %v672_v38, %v673_v26  ;;  %v676_v29 = vsel %vm126_vm2, %v674_v42, %v675_v18  ;;  %v679_v8 = vsel %vm126_vm2, %v675_v18, %v672_v38  ;;  %v2223_v18 = vld [vmem:[%s2912_s4 + $0x20] sm:$0xff]   ;;  %v2225_v38 = vld [vmem:[%s2912_s4 + $0x30] sm:$0xff]   ;;  %v2226_v26 = vld [vmem:[%s2912_s4 + $0x38] sm:$0xff]  }
 0x361   :  { %v684_v10 = vpack.c.bf16 %v669_v55, %v668_v53  ;;  %v685_v11 = vpack.c.bf16 %v671_v57, %v670_v56  ;;  %v680_v15 = vmul.f32 %v678_v4, %v2469_v59  ;;  %v681_v16 = vmul.f32 %v677_v63, %v2467_v58  ;;  %v2227_v42 = vld [vmem:[%s2912_s4 + $0x80] sm:$0xff]   ;;  %v2232_v53 = vld [vmem:[%s2912_s4 + $0xa8] sm:$0xff]   ;;  %v2233_v55 = vld [vmem:[%s2912_s4 + $0xb0] sm:$0xff]  }
 0x362   :  { %v682_v19 = vmul.f32 %v676_v29, %v2485_v2  ;;  %v683_v22 = vmul.f32 %v679_v8, %v2483_v1  ;;  %v2231_v52 = vld [vmem:[%s2912_s4 + $0xa0] sm:$0xff]   ;;  %v2234_v56 = vld [vmem:[%s2912_s4 + $0xb8] sm:$0xff]   ;;  %v72_v4 = vld [vmem:[%s2915_s11 + $0x10] sm:$0xff] }
 0x363   :  { %1969 = vmatpush3.bf16.msra.mxu1 %v2220_v37  ;;  %1982 = vmatprep.mubr.bf16.mxu1 %v684_v10  ;;  %v914_v39 = vpack.c.bf16 %v681_v16, %v680_v15  ;;  %v2224_v37 = vld [vmem:[%s2912_s4 + $0x28] sm:$0xff]   ;;  %v70_v57 = vld [vmem:[%s2915_s11] sm:$0xff]  ;;  %v73_v29 = vld [vmem:[%s2915_s11 + $0x18] sm:$0xff] }
 0x364   :  { %1970 = vmatprep.subr.bf16.mxu1 %v2221_v62  ;;  %v915_v25 = vpack.c.bf16 %v683_v22, %v682_v19  ;;  %v74_v8 = vld [vmem:[%s2915_s11 + $0x20] sm:$0xff]  ;;  %v2134_v10 = vpack.c.bf16 %v73_v29, %v72_v4  ;;  %v76_v16 = vld [vmem:[%s2915_s11 + $0x30] sm:$0xff]  ;;  %v77_v19 = vld [vmem:[%s2915_s11 + $0x38] sm:$0xff] }
 0x365   :  { %v2140_v22 = vpack.c.bf16 %v77_v19, %v76_v16 }
 0x367   :  { %1971 = vmatpush3.bf16.msra.mxu1 %v2221_v62  ;;  %v71_v62 = vld [vmem:[%s2915_s11 + $0x8] sm:$0xff] }
 0x368   :  { %1972 = vmatprep.subr.bf16.mxu1 %v2222_v32  ;;  %v2131_v63 = vpack.c.bf16 %v71_v62, %v70_v57 }
 0x36a   :  { %2132 = vmatpush3.bf16.msra.mxu0 %v2131_v63 }
 0x36b   :  { %1973 = vmatpush3.bf16.msra.mxu1 %v2222_v32  ;;  %2133 = vmatprep.subr.bf16.mxu0 %v2244_v36 }
 0x36c   :  { %1974 = vmatprep.subr.bf16.mxu1 %v2223_v18 }
 0x36e   :  { %2135 = vmatpush3.bf16.msra.mxu0 %v2134_v10 }
 0x36f   :  { %1975 = vmatpush3.bf16.msra.mxu1 %v2223_v18  ;;  %2136 = vmatprep.subr.bf16.mxu0 %v2244_v36 }
 0x370   :  { %1976 = vmatprep.subr.bf16.mxu1 %v2224_v37 }
 0x373   :  { %1977 = vmatpush3.bf16.msra.mxu1 %v2224_v37 }
 0x374   :  { %1978 = vmatprep.subr.bf16.mxu1 %v2225_v38 }
 0x377   :  { %1979 = vmatpush3.bf16.msra.mxu1 %v2225_v38 }
 0x378   :  { %1980 = vmatprep.subr.bf16.mxu1 %v2226_v26 }
 0x37b   :  { %1981 = vmatpush3.bf16.msra.mxu1 %v2226_v26 }
 0x37c   :  { %1986 = vmatprep.subr.bf16.mxu1 %v2227_v42 }
 0x37e   :  { %1983 = vmatmul.mubr.bf16.vlgmr.msra.gmra.mrb[4].mxu1 %v685_v11  ;;  %v75_v11 = vld [vmem:[%s2915_s11 + $0x28] sm:$0xff] }
 0x37f   :  { %1987 = vmatpush3.bf16.msra.mxu1 %v2227_v42  ;;  %2002 = vmatprep.mubr.bf16.mxu1 %v914_v39  ;;  %v2137_v15 = vpack.c.bf16 %v75_v11, %v74_v8 }
 0x380   :  { %1988 = vmatprep.subr.bf16.mxu1 %v2228_v47 }
 0x381   :  { %2138 = vmatpush3.bf16.msra.mxu0 %v2137_v15 }
 0x382   :  { %2139 = vmatprep.subr.bf16.mxu0 %v2244_v36 }
 0x383   :  { %1989 = vmatpush3.bf16.msra.mxu1 %v2228_v47 }
 0x384   :  { %1990 = vmatprep.subr.bf16.mxu1 %v2229_v48 }
 0x385   :  { %2141 = vmatpush3.bf16.msra.mxu0 %v2140_v22 }
 0x386   :  { %2030 = vmatprep.subr.bf16.mxu0 %v2333_v5 }
 0x387   :  { %1991 = vmatpush3.bf16.msra.mxu1 %v2229_v48 }
 0x388   :  { %1992 = vmatprep.subr.bf16.mxu1 %v2230_v51 }
 0x38b   :  { %1993 = vmatpush3.bf16.msra.mxu1 %v2230_v51 }
 0x38c   :  { %1994 = vmatprep.subr.bf16.mxu1 %v2231_v52 }
 0x38f   :  { %1995 = vmatpush3.bf16.msra.mxu1 %v2231_v52 }
 0x390   :  { %1996 = vmatprep.subr.bf16.mxu1 %v2232_v53 }
 0x393   :  { %1997 = vmatpush3.bf16.msra.mxu1 %v2232_v53 }
 0x394   :  { %1998 = vmatprep.subr.bf16.mxu1 %v2233_v55 }
 0x397   :  { %1999 = vmatpush3.bf16.msra.mxu1 %v2233_v55 }
 0x398   :  { %2000 = vmatprep.subr.bf16.mxu1 %v2234_v56 }
 0x39b   :  { %2001 = vmatpush3.bf16.msra.mxu1 %v2234_v56 }
 0x39c   :  { %2025 = vmatprep.subr.mxu1 %v2246_v27 }
 0x39e   :  { %2003 = vmatmul.mubr.bf16.vlgmr.msra.gmra.mrb[4].mxu1 %v915_v25 }
 0x39f   :  { %2027 = vmatprep.mubr.msk.f32.mxu1 %vm2245_vm3, %v2246_v27 }
 0x471   :  { %v2760_v39 = vpop.f32.mrb[4].mxu1 }
 0x472   :  { %v2762_v32 = vpop.f32.mrb[5].mxu1  ;;  %v1048_v38 = vmul.f32 %v2760_v39, %v2760_v39  ;;  %v1036_v51 = vsel %vm207_vm0, %v2760_v39, 0.0 }
 0x473   :  { %v1046_v25 = vmul.f32 %v2762_v32, %v2762_v32  ;;  %v2766_v18 = vpop.f32.mrb[6].mxu1  ;;  %v1033_v26 = vsel %vm207_vm0, %v2762_v32, 0.0 }
 0x474   :  { %v2768_v37 = vpop.f32.mrb[7].mxu1  ;;  %v1049_v53 = vmul.f32 %v2766_v18, %v2766_v18  ;;  %v1053_v62 = vsel %vm207_vm0, %v1048_v38, 0.0  ;;  %v1038_v63 = vsel %vm207_vm0, %v2766_v18, 0.0 }
 0x475   :  { %v1034_v42 = vsel %vm207_vm0, %v2768_v37, 0.0  ;;  %v1047_v47 = vmul.f32 %v2768_v37, %v2768_v37  ;;  %v1050_v52 = vsel %vm207_vm0, %v1046_v25, 0.0 }
 0x476   :  { %v1035_v48 = vadd.f32 %v1034_v42, %v1033_v26  ;;  %v1055_v8 = vsel %vm207_vm0, %v1049_v53, 0.0  ;;  %v78_v53 = vld [vmem:[%s2916_s12] sm:$0xf] }
 0x477   :  { %v1051_v55 = vsel %vm207_vm0, %v1047_v47, 0.0  ;;  %2026 = vmatpush3.msk.msra.mxu1 %vm1178_vm6, %v78_v53 }
 0x478   :  { %v1037_v56 = vadd.f32 %v1036_v51, %v1035_v48  ;;  %v1052_v57 = vadd.f32 %v1051_v55, %v1050_v52  ;;  %2101 = vmatprep.subr.mxu1 %v2246_v27 }
 0x47a   :  { %v1039_v4 = vadd.f32 %v1038_v63, %v1037_v56  ;;  %v1054_v29 = vadd.f32 %v1053_v62, %v1052_v57 }
 0x47c   :  { %v1040_v10 = vrot.slane %v1039_v4, 4  ;;  %v1056_v11 = vadd.f32 %v1055_v8, %v1054_v29  ;;  %v1143_v29 = vld [vmem:[%s2917_s5] sm:$0x1] }
 0x47e   :  { %v1041_v15 = vadd.f32 %v1040_v10, %v1039_v4  ;;  %v1057_v16 = vrot.slane %v1056_v11, 4 }
 0x480   :  { %v1042_v19 = vrot.slane %v1041_v15, 2  ;;  %v1058_v22 = vadd.f32 %v1057_v16, %v1056_v11  ;;  %v1164_v11 = vld [vmem:[%s2918_s6] sm:$0x1] }
 0x482   :  { %v1043_v25 = vadd.f32 %v1042_v19, %v1041_v15  ;;  %v1059_v26 = vrot.slane %v1058_v22, 2 }
 0x484   :  { %v1044_v42 = vrot.slane %v1043_v25, 1  ;;  %v1060_v47 = vadd.f32 %v1059_v26, %v1058_v22 }
 0x486   :  { %v1061_v48 = vrot.slane %v1060_v47, 1  ;;  %v1045_v51 = vadd.f32 %v1044_v42, %v1043_v25 }
 0x488   :  { %v1062_v38 = vadd.f32 %v1061_v48, %v1060_v47 }
 0x48a   :  { %v1063_v52 = vsel %vm457_vm4, %v1045_v51, %v1062_v38 }
 0x48b   :  { %2023 = vmatmul.mubr.msk.f32.vlgmr.msra.gmra.mrb[4].mxu0 %vm207_vm0, %v1063_v52 }
 0x48c   :  { %2031 = vmatpush3.bf16.msra.mxu0 %v2333_v5 }
 0x48d   :  { %2032 = vmatprep.subr.bf16.mxu0 %v2338_v7 }
 0x490   :  { %2033 = vmatpush3.bf16.msra.mxu0 %v2338_v7 }
 0x491   :  { %2034 = vmatprep.subr.bf16.mxu0 %v2357_v14 }
 0x494   :  { %2035 = vmatpush3.bf16.msra.mxu0 %v2357_v14 }
 0x495   :  { %2036 = vmatprep.subr.bf16.mxu0 %v2378_v23 }
 0x498   :  { %2037 = vmatpush3.bf16.msra.mxu0 %v2378_v23 }
 0x499   :  { %2042 = vmatprep.subr.bf16.mxu0 %v2394_v33 }
 0x55e   :  { %v1133_v5 = vpop.f32.mrb[4].mxu0 }
 0x55f   :  { %v1137_v7 = vmul.f32 0.001953125, %v1133_v5  ;;  %v2024_v55 = vpop.f32.mrb[5].mxu0 }
 0x561   :  { %v1138_v56 = vmul.f32 %v1137_v7, %v1137_v7 }
 0x563   :  { %v1140_v57 = vrot.slane %v1138_v56, 7 }
 0x565   :  { %v1142_v14 = vsub.f32 %v1137_v7, %v1140_v57 }
 0x567   :  { %v1144_v62 = vadd.f32 1e-05, %v1142_v14 }
 0x569   :  { %2239 = vrsqrt.f32 %v1144_v62 }
 0x573   :  { %v2240_v63 = vpop.eup %2239 }
 0x574   :  { %v1153_v23 = vrot.slane %v2240_v63, %v2605_v54 }
 0x576   :  { %v1154_v4 = vcombine.high %v1153_v23, %v1153_v23 }
 0x578   :  { %v1161_v8 = vrot.slane %v1154_v4, %v2605_v54 }
 0x57a   :  { %v1163_v10 = vmul.f32 %v1161_v8, %v1143_v29 }
 0x57c   :  { %v1165_v15 = vmul.f32 %v1163_v10, %v1137_v7 }
 0x57e   :  { %v1166_v16 = vsub.f32 %v1164_v11, %v1165_v15 }
 0x580   :  { %v1171_v19 = vrot.slane %v1166_v16, %v2621_v6 }
 0x582   :  { %v1173_v22 = vsel %vm457_vm4, %v1163_v10, %v1171_v19 }
 0x583   :  { %2028 = vmatmul.mubr.msk.f32.vlgmr.msra.gmra.mrb[8].mxu1 %vm1174_vm7, %v1173_v22 }
 0x584   :  { %2102 = vmatpush3.msra.mxu1 %v2598_v21  ;;  %2103 = vmatprep.mubr.msk.f32.mxu1 %vm2245_vm3, %v2246_v27 }
 0x656   :  { %v1248_v25 = vpop.f32.mrb[8].mxu1 }
 0x657   :  { %v1255_v26 = vrot.slane %v1248_v25, %v2621_v6  ;;  %v2029_v42 = vpop.f32.mrb[9].mxu1  ;;  %v1263_v47 = vrot.slane %v1248_v25, %v2652_v30 }
 0x659   :  { %v1256_v48 = vmul.f32 %v1255_v26, %v2762_v32  ;;  %v1257_v51 = vmul.f32 %v1255_v26, %v2768_v37  ;;  %v1258_v38 = vmul.f32 %v2760_v39, %v1255_v26  ;;  %v1259_v52 = vmul.f32 %v2766_v18, %v1255_v26 }
 0x65b   :  { %v1264_v53 = vadd.f32 %v1263_v47, %v1256_v48  ;;  %v1265_v5 = vadd.f32 %v1263_v47, %v1257_v51  ;;  %v1266_v21 = vadd.f32 %v1263_v47, %v1258_v38  ;;  %v1267_v7 = vadd.f32 %v1263_v47, %v1259_v52 }
 0x65d   :  { %v1268_v55 = vmax.f32 %v1264_v53, 0.0  ;;  %v1269_v56 = vmax.f32 %v1265_v5, 0.0  ;;  %v1270_v57 = vmax.f32 %v1266_v21, 0.0  ;;  %v1271_v14 = vmax.f32 %v1267_v7, 0.0 }
 0x65f   :  { %v1272_v62 = vrot.slane %v1268_v55, 7  ;;  %v1273_v63 = vrot.slane %v1269_v56, 7  ;;  %v1274_v23 = vrot.slane %v1270_v57, 7  ;;  %v1275_v4 = vrot.slane %v1271_v14, 7 }
 0x660   :  { %v1284_v29 = vrot.slane %v1268_v55, 1  ;;  %v1285_v32 = vrot.slane %v1269_v56, 1  ;;  %v1286_v8 = vrot.slane %v1270_v57, 1  ;;  %v1287_v37 = vrot.slane %v1271_v14, 1 }
 0x661   :  { %v1298_v10 = vpack.c.bf16 %v1269_v56, %v1268_v55  ;;  %v1299_v39 = vpack.c.bf16 %v1271_v14, %v1270_v57  ;;  %v1278_v18 = vsel %vm93_vm1, %v1272_v62, %v1273_v63  ;;  %v1279_v11 = vsel %vm93_vm1, %v1275_v4, %v1272_v62 }
 0x662   :  { %v1280_v15 = vmul.f32 %v1279_v11, %v2450_v46  ;;  %v1281_v16 = vmul.f32 %v1278_v18, %v2458_v50  ;;  %v1276_v19 = vsel %vm93_vm1, %v1274_v23, %v1275_v4  ;;  %v1277_v22 = vsel %vm93_vm1, %v1273_v63, %v1274_v23 }
 0x663   :  { %2038 = vmatprep.mubr.msk.bf16.mxu0 %vm207_vm0, %v1298_v10  ;;  %v1282_v25 = vmul.f32 %v1277_v22, %v2448_v45  ;;  %v1283_v26 = vmul.f32 %v1276_v19, %v2456_v49  ;;  %v1289_v42 = vsel %vm126_vm2, %v1285_v32, %v1286_v8  ;;  %v1290_v46 = vsel %vm126_vm2, %v1284_v29, %v1285_v32 }
 0x664   :  { %2039 = vmatmul.mubr.msk.bf16.vlgmr.msra.gmra.mrb[8].mxu0 %vm207_vm0, %v1299_v39  ;;  %v1296_v50 = vpack.c.bf16 %v1281_v16, %v1280_v15  ;;  %v1292_v47 = vmul.f32 %v1290_v46, %v2469_v59  ;;  %v1293_v48 = vmul.f32 %v1289_v42, %v2467_v58  ;;  %v1288_v51 = vsel %vm126_vm2, %v1286_v8, %v1287_v37 }
 0x665   :  { %2043 = vmatpush3.bf16.msra.mxu0 %v2394_v33  ;;  %v1297_v45 = vpack.c.bf16 %v1283_v26, %v1282_v25  ;;  %v1291_v49 = vsel %vm126_vm2, %v1287_v37, %v1284_v29  ;;  %v1294_v38 = vmul.f32 %v1288_v51, %v2485_v2 }
 0x666   :  { %2044 = vmatprep.subr.bf16.mxu0 %v2401_v34  ;;  %2050 = vmatprep.mubr.msk.bf16.mxu0 %vm207_vm0, %v1296_v50  ;;  %v1410_v52 = vpack.c.bf16 %v1293_v48, %v1292_v47  ;;  %v1295_v59 = vmul.f32 %v1291_v49, %v2483_v1 }
 0x668   :  { %v1411_v53 = vpack.c.bf16 %v1295_v59, %v1294_v38 }
 0x669   :  { %2045 = vmatpush3.bf16.msra.mxu0 %v2401_v34 }
 0x66a   :  { %2046 = vmatprep.subr.bf16.mxu0 %v2409_v35 }
 0x66d   :  { %2047 = vmatpush3.bf16.msra.mxu0 %v2409_v35 }
 0x66e   :  { %2048 = vmatprep.subr.bf16.mxu0 %v2426_v40 }
 0x671   :  { %2049 = vmatpush3.bf16.msra.mxu0 %v2426_v40 }
 0x672   :  { %2054 = vmatprep.subr.bf16.mxu0 %v2442_v44 }
 0x674   :  { %2051 = vmatmul.mubr.msk.bf16.vlgmr.msra.gmra.mrb[8].mxu0 %vm207_vm0, %v1297_v45 }
 0x675   :  { %2055 = vmatpush3.bf16.msra.mxu0 %v2442_v44  ;;  %2062 = vmatprep.mubr.msk.bf16.mxu0 %vm207_vm0, %v1410_v52 }
 0x676   :  { %2056 = vmatprep.subr.bf16.mxu0 %v2474_v60 }
 0x679   :  { %2057 = vmatpush3.bf16.msra.mxu0 %v2474_v60 }
 0x67a   :  { %2058 = vmatprep.subr.bf16.mxu0 %v2491_v3 }
 0x67d   :  { %2059 = vmatpush3.bf16.msra.mxu0 %v2491_v3 }
 0x67e   :  { %2060 = vmatprep.subr.bf16.mxu0 %v2501_v9 }
 0x681   :  { %2061 = vmatpush3.bf16.msra.mxu0 %v2501_v9 }
 0x682   :  { %2142 = vmatprep.subr.bf16.mxu0 %v2244_v36 }
 0x684   :  { %2063 = vmatmul.mubr.msk.bf16.vlgmr.msra.gmra.mrb[8].mxu0 %vm207_vm0, %v1411_v53 }
 0x685   :  { %2144 = vmatpush3.bf16.msra.mxu0 %v2428_v41  ;;  %2098 = vmatprep.mubr.msk.f32.mxu0 %vm2245_vm3, %v2246_v27 }
 0x686   :  { %2145 = vmatprep.subr.bf16.mxu0 %v2244_v36 }
 0x689   :  { %2147 = vmatpush3.bf16.msra.mxu0 %v2434_v43 }
 0x68a   :  { %2148 = vmatprep.subr.bf16.mxu0 %v2244_v36 }
 0x68d   :  { %2150 = vmatpush3.bf16.msra.mxu0 %v2514_v12 }
 0x68e   :  { %2151 = vmatprep.subr.bf16.mxu0 %v2244_v36 }
 0x691   :  { %2153 = vmatpush3.bf16.msra.mxu0 %v2524_v17 }
 0x692   :  { %2154 = vmatprep.subr.bf16.mxu0 %v2244_v36 }
 0x695   :  { %2156 = vmatpush3.bf16.msra.mxu0 %v2534_v20 }
 0x696   :  { %2157 = vmatprep.subr.bf16.mxu0 %v2244_v36 }
 0x699   :  { %2159 = vmatpush3.bf16.msra.mxu0 %v2544_v24 }
 0x69a   :  { %2160 = vmatprep.subr.bf16.mxu0 %v2244_v36 }
 0x69d   :  { %2162 = vmatpush3.bf16.msra.mxu0 %v2557_v28 }
 0x69e   :  { %2163 = vmatprep.subr.bf16.mxu0 %v2244_v36 }
 0x6a1   :  { %2165 = vmatpush3.bf16.msra.mxu0 %v2567_v31 }
 0x757   :  { %v2064_v13 = vpop.f32.mrb[8].mxu0 }
 0x758   :  { %v1452_v33 = vpop.f32.mrb[9].mxu0  ;;  %v1482_v44 = vmul.f32 %v2064_v13, %v2064_v13 }
 0x759   :  { %v2065_v34 = vpop.f32.mrb[10].mxu0  ;;  %v1480_v40 = vmul.f32 %v1452_v33, %v1452_v33 }
 0x75a   :  { %v1455_v35 = vpop.f32.mrb[11].mxu0  ;;  %v1483_v1 = vmul.f32 %v2065_v34, %v2065_v34 }
 0x75b   :  { %v1471_v41 = vadd.f32 %v1455_v35, %v1452_v33  ;;  %v1481_v43 = vmul.f32 %v1455_v35, %v1455_v35 }
 0x75d   :  { %v1472_v58 = vadd.f32 %v2064_v13, %v1471_v41  ;;  %v1484_v60 = vadd.f32 %v1481_v43, %v1480_v40 }
 0x75f   :  { %v1473_v2 = vadd.f32 %v2065_v34, %v1472_v58  ;;  %v1485_v3 = vadd.f32 %v1484_v60, %v1482_v44 }
 0x761   :  { %v1474_v9 = vrot.slane %v1473_v2, 4  ;;  %v1486_v12 = vadd.f32 %v1485_v3, %v1483_v1 }
 0x763   :  { %v1475_v17 = vadd.f32 %v1474_v9, %v1473_v2  ;;  %v1487_v20 = vrot.slane %v1486_v12, 4 }
 0x765   :  { %v1476_v36 = vrot.slane %v1475_v17, 2  ;;  %v1488_v24 = vadd.f32 %v1487_v20, %v1486_v12 }
 0x767   :  { %v1477_v27 = vadd.f32 %v1476_v36, %v1475_v17  ;;  %v1489_v28 = vrot.slane %v1488_v24, 2 }
 0x769   :  { %v1478_v31 = vrot.slane %v1477_v27, 1  ;;  %v1490_v5 = vadd.f32 %v1489_v28, %v1488_v24 }
 0x76b   :  { %v1491_v21 = vrot.slane %v1490_v5, 1  ;;  %v1479_v7 = vadd.f32 %v1478_v31, %v1477_v27 }
 0x76d   :  { %v1492_v55 = vadd.f32 %v1491_v21, %v1490_v5 }
 0x76f   :  { %v1493_v56 = vsel %vm457_vm4, %v1479_v7, %v1492_v55 }
 0x770   :  { %2099 = vmatmul.mubr.f32.vlgmr.msra.gmra.mrb[6].mxu0 %v1493_v56 }
 0x843   :  { %v1560_v57 = vpop.f32.mrb[6].mxu0 }
 0x844   :  { %v1564_v14 = vmul.f32 0.001953125, %v1560_v57  ;;  %v2100_v62 = vpop.f32.mrb[7].mxu0 }
 0x846   :  { %v1565_v63 = vmul.f32 %v1564_v14, %v1564_v14 }
 0x848   :  { %v1567_v23 = vrot.slane %v1565_v63, 7 }
 0x84a   :  { %v1569_v4 = vsub.f32 %v1564_v14, %v1567_v23 }
 0x84c   :  { %v1570_v29 = vadd.f32 1e-05, %v1569_v4 }
 0x84e   :  { %2241 = vrsqrt.f32 %v1570_v29 }
 0x858   :  { %v2242_v32 = vpop.eup %2241 }
 0x859   :  { %v1579_v8 = vrot.slane %v2242_v32, %v2605_v54 }
 0x85b   :  { %v1580_v37 = vcombine.high %v1579_v8, %v1579_v8 }
 0x85d   :  { %v1587_v10 = vrot.slane %v1580_v37, %v2605_v54 }
 0x85f   :  { %v1589_v39 = vmul.f32 %v1587_v10, %v2611_v61 }
 0x861   :  { %v1590_v18 = vmul.f32 %v1589_v39, %v1564_v14 }
 0x863   :  { %v1591_v11 = vsub.f32 %v2618_v0, %v1590_v18 }
 0x865   :  { %v1596_v15 = vrot.slane %v1591_v11, %v2621_v6 }
 0x867   :  { %v1598_v16 = vsel %vm457_vm4, %v1589_v39, %v1596_v15 }
 0x868   :  { %2104 = vmatmul.mubr.msk.f32.vlgmr.msra.gmra.mrb[10].mxu1 %vm566_vm5, %v1598_v16 }
 0x93b   :  { %v1668_v19 = vpop.f32.mrb[10].mxu1 }
 0x93c   :  { %v1675_v22 = vrot.slane %v1668_v19, %v2621_v6  ;;  %v2105_v25 = vpop.f32.mrb[11].mxu1  ;;  %v1683_v26 = vrot.slane %v1668_v19, %v2652_v30 }
 0x93e   :  { %v1676_v42 = vmul.f32 %v1675_v22, %v1452_v33  ;;  %v1677_v46 = vmul.f32 %v1675_v22, %v1455_v35  ;;  %v1678_v54 = vmul.f32 %v2064_v13, %v1675_v22  ;;  %v1679_v50 = vmul.f32 %v2065_v34, %v1675_v22 }
 0x940   :  { %v1684_v61 = vadd.f32 %v1683_v26, %v1676_v42  ;;  %v1685_v47 = vadd.f32 %v1683_v26, %v1677_v46  ;;  %v1686_v48 = vadd.f32 %v1683_v26, %v1678_v54  ;;  %v1687_v0 = vadd.f32 %v1683_v26, %v1679_v50 }
 0x942   :  { %v1688_v51 = vmax.f32 %v1684_v61, 0.0  ;;  %v1689_v45 = vmax.f32 %v1685_v47, 0.0  ;;  %v1690_v49 = vmax.f32 %v1686_v48, 0.0  ;;  %v1691_v38 = vmax.f32 %v1687_v0, 0.0 }
 0x944   :  { %1692 = vst [vmem:[%s2919_s13] sm:$0xff] %v1688_v51  ;;  %1693 = vst [vmem:[%s2919_s13 + $0x8] sm:$0xff] %v1689_v45 }
 0x945   :  { %1694 = vst [vmem:[%s2919_s13 + $0x10] sm:$0xff] %v1690_v49  ;;  %1695 = vst [vmem:[%s2919_s13 + $0x18] sm:$0xff] %v1691_v38 }

</bundles_post_ra>
